<compile_context>
chip_gen: v7x
topology: tpu7x:2x2x1
jax: 0.10.0
libtpu: 0.0.40
codegen_flags: <defaults>
</compile_context>

<pallas_src>
import jax
import jax.numpy as jnp
from jax import lax
from jax.experimental import pallas as pl
from jax.experimental.pallas import tpu as pltpu


def _make_kernel(valid_rows, block_rows):
    """Build the per-block partial-sum kernel (static shape info via closure)."""
    need_mask = (valid_rows % block_rows) != 0  # last block partially OOB?

    def kernel(eps_ref, pi_ref, pik_ref, a_ref, out_ref):
        # Scalars hoisted once per block.
        eps = eps_ref[0]
        lo = jnp.float32(1.0) - eps
        hi = jnp.float32(1.0) + eps

        # Native-dtype DMA; upcast in-kernel so compute is always f32.
        pi = pi_ref[...].astype(jnp.float32)
        pik = pik_ref[...].astype(jnp.float32)
        a = a_ref[...].astype(jnp.float32)

        ratio = pi / (pik + jnp.float32(1e-5))  # exact divide for torch parity
        left = ratio * a
        right = jnp.clip(ratio, lo, hi) * a
        m = jnp.minimum(left, right)

        if need_mask:
            # Zero out rows that fall past the real array (OOB reads of the
            # last block contain unspecified data).
            row0 = pl.program_id(0) * block_rows
            ridx = lax.broadcasted_iota(jnp.int32, m.shape, 0) + row0
            m = jnp.where(ridx < valid_rows, m, jnp.float32(0.0))

        # Layout-natural partial reduction: fold the sublane-major axis into
        # (tile_row, 8) and add tile rows together -> pure vreg (VPU) adds.
        tr, c = m.shape
        out_ref[0] = m.reshape(tr // 8, 8, c).sum(axis=0)  # (8, c), lane-dense

    return kernel


def ac_actor_loss(pi, pi_k, A, eps, *, lanes=1024, max_block_rows=512):
    """Pallas implementation of AC_Actor_Loss.forward. Returns a scalar f32."""
    assert pi.shape == pi_k.shape == A.shape
    assert max_block_rows % 8 == 0
    n = pi.size

    # Flatten to (rows, lanes); rows aligned to 8 sublanes only (tiny pad).
    rows = max(8, ((-(-n // lanes) + 7) // 8) * 8)
    padded = rows * lanes
    block_rows = min(max_block_rows, rows)          # multiple of 8 by constr.
    grid_n = -(-rows // block_rows)                 # last block may be partial

    def prep(x):
        x = jnp.reshape(x, (-1,))
        if padded > n:
            # Zero padding is exact: A == 0 makes both branches 0.
            x = jnp.pad(x, (0, padded - n))
        return jnp.reshape(x, (rows, lanes))

    pi2, pik2, a2 = prep(pi), prep(pi_k), prep(A)
    eps_arr = jnp.asarray([eps], dtype=jnp.float32)

    in_blk = pl.BlockSpec((block_rows, lanes), lambda i, eps_ref: (i, 0))
    out_blk = pl.BlockSpec((1, 8, lanes), lambda i, eps_ref: (i, 0, 0))

    partials = pl.pallas_call(
        _make_kernel(rows, block_rows),
        out_shape=jax.ShapeDtypeStruct((grid_n, 8, lanes), jnp.float32),
        grid_spec=pltpu.PrefetchScalarGridSpec(
            num_scalar_prefetch=1,
            grid=(grid_n,),
            in_specs=[in_blk, in_blk, in_blk],
            out_specs=out_blk,
        ),
        compiler_params=pltpu.CompilerParams(
            dimension_semantics=("parallel",),
            vmem_limit_bytes=32 * 1024 * 1024,
        ),
    )(eps_arr, pi2, pik2, a2)

    # Tiny final reduction + mean + negate outside the kernel.
    return -(jnp.sum(partials, dtype=jnp.float32) / jnp.float32(n))


def _reference(pi, pi_k, A, eps):
    ratio = pi / (pi_k + 1e-5)
    left = ratio * A
    right = jnp.clip(ratio, 1.0 - eps, 1.0 + eps) * A
    return -jnp.mean(jnp.minimum(left, right))


if __name__ == "__main__":
    key = jax.random.PRNGKey(0)
    eps = 0.2

    # Test 1: small batch x action-dim (typical PPO shapes).
    k1, k2, k3, k4, k5, k6 = jax.random.split(key, 6)
    B, D = 16, 128
    pi = jax.random.uniform(k1, (B, D), jnp.float32, minval=0.05, maxval=1.0)
    pi_k = jax.random.uniform(k2, (B, D), jnp.float32, minval=0.05, maxval=1.0)
    A = jax.random.normal(k3, (B, D), jnp.float32)

    loss = jax.block_until_ready(ac_actor_loss(pi, pi_k, A, eps))
    ref = _reference(pi, pi_k, A, eps)
    assert jnp.allclose(loss, ref, rtol=1e-5, atol=1e-5), (loss, ref)

    # Test 2: ragged 1-D size that exercises the masked (partially OOB) last
    # block (rows=24, block_rows=16 -> grid of 2, last block half out of range).
    N2 = 20000
    pi_b = jax.random.uniform(k4, (N2,), jnp.float32, minval=0.05, maxval=1.0)
    pik_b = jax.random.uniform(k5, (N2,), jnp.float32, minval=0.05, maxval=1.0)
    A_b = jax.random.normal(k6, (N2,), jnp.float32)

    loss2 = jax.block_until_ready(
        ac_actor_loss(pi_b, pik_b, A_b, eps, max_block_rows=16))
    ref2 = _reference(pi_b, pik_b, A_b, eps)
    assert jnp.allclose(loss2, ref2, rtol=1e-5, atol=1e-5), (loss2, ref2)

    print("KERNEL_OK")
</pallas_src>

<mosaic_0001>
module attributes {stable_mosaic.version = 11 : i64} {
  func.func @kernel(%arg0: i32, %arg1: memref<1xf32, #tpu.memory_space<smem>>, %arg2: memref<8x1024xf32, #tpu.memory_space<vmem>>, %arg3: memref<8x1024xf32, #tpu.memory_space<vmem>>, %arg4: memref<8x1024xf32, #tpu.memory_space<vmem>>, %arg5: memref<1x8x1024xf32, #tpu.memory_space<vmem>>) attributes {dimension_semantics = [#tpu.dimension_semantics<parallel>], iteration_bounds = array<i64: 1>, scalar_prefetch = 1 : i64, scratch_operands = 0 : i64, tpu.core_type = #tpu.core_type<tc>, window_params = [{transform_indices = @transform_0, window_bounds = array<i64: 8, 1024>}, {transform_indices = @transform_1, window_bounds = array<i64: 8, 1024>}, {transform_indices = @transform_2, window_bounds = array<i64: 8, 1024>}, {transform_indices = @transform_3, window_bounds = array<i64: 1, 8, 1024>}]} {
    %c0 = arith.constant 0 : index
    %0 = memref.load %arg1[%c0] : memref<1xf32, #tpu.memory_space<smem>>
    %cst = arith.constant 1.000000e+00 : f32
    %1 = arith.subf %cst, %0 : f32
    %cst_0 = arith.constant 1.000000e+00 : f32
    %2 = arith.addf %cst_0, %0 : f32
    %c0_1 = arith.constant 0 : index
    %c0_2 = arith.constant 0 : index
    %3 = vector.load %arg2[%c0_1, %c0_2] : memref<8x1024xf32, #tpu.memory_space<vmem>>, vector<8x1024xf32>
    %c0_3 = arith.constant 0 : index
    %c0_4 = arith.constant 0 : index
    %4 = vector.load %arg3[%c0_3, %c0_4] : memref<8x1024xf32, #tpu.memory_space<vmem>>, vector<8x1024xf32>
    %c0_5 = arith.constant 0 : index
    %c0_6 = arith.constant 0 : index
    %5 = vector.load %arg4[%c0_5, %c0_6] : memref<8x1024xf32, #tpu.memory_space<vmem>>, vector<8x1024xf32>
    %cst_7 = arith.constant 9.99999974E-6 : f32
    %6 = vector.broadcast %cst_7 : f32 to vector<8x1024xf32>
    %7 = arith.addf %4, %6 : vector<8x1024xf32>
    %8 = arith.divf %3, %7 : vector<8x1024xf32>
    %9 = arith.mulf %8, %5 : vector<8x1024xf32>
    %10 = vector.broadcast %1 : f32 to vector<8x1024xf32>
    %11 = arith.maximumf %10, %8 : vector<8x1024xf32>
    %12 = vector.broadcast %2 : f32 to vector<8x1024xf32>
    %13 = arith.minimumf %12, %11 : vector<8x1024xf32>
    %14 = arith.mulf %13, %5 : vector<8x1024xf32>
    %15 = arith.minimumf %9, %14 : vector<8x1024xf32>
    %16 = vector.shape_cast %15 : vector<8x1024xf32> to vector<1x8x1024xf32>
    %cst_8 = arith.constant dense<0.000000e+00> : vector<8x1024xf32>
    %17 = vector.multi_reduction <add>, %16, %cst_8 [0] : vector<1x8x1024xf32> to vector<8x1024xf32>
    %c0_9 = arith.constant 0 : index
    %c0_10 = arith.constant 0 : index
    %c0_11 = arith.constant 0 : index
    %18 = vector.load %arg5[%c0_9, %c0_10, %c0_11] : memref<1x8x1024xf32, #tpu.memory_space<vmem>>, vector<1x8x1024xf32>
    %19 = vector.shape_cast %18 : vector<1x8x1024xf32> to vector<8x1024xf32>
    %20 = vector.shape_cast %17 : vector<8x1024xf32> to vector<1x8x1024xf32>
    tpu.vector_store %arg5[%c0_9, %c0_10, %c0_11], %20 {strides = array<i32>} : memref<1x8x1024xf32, #tpu.memory_space<vmem>>, vector<1x8x1024xf32>,
    return
  }
  func.func @transform_0(%arg0: i32, %arg1: memref<1xf32, #tpu.memory_space<smem>>) -> (i32, i32) {
    %c0_i32 = arith.constant 0 : i32
    %c0_i32_0 = arith.constant 0 : i32
    return %arg0, %c0_i32 : i32, i32
  }
  func.func @transform_1(%arg0: i32, %arg1: memref<1xf32, #tpu.memory_space<smem>>) -> (i32, i32) {
    %c0_i32 = arith.constant 0 : i32
    %c0_i32_0 = arith.constant 0 : i32
    return %arg0, %c0_i32 : i32, i32
  }
  func.func @transform_2(%arg0: i32, %arg1: memref<1xf32, #tpu.memory_space<smem>>) -> (i32, i32) {
    %c0_i32 = arith.constant 0 : i32
    %c0_i32_0 = arith.constant 0 : i32
    return %arg0, %c0_i32 : i32, i32
  }
  func.func @transform_3(%arg0: i32, %arg1: memref<1xf32, #tpu.memory_space<smem>>) -> (i32, i32, i32) {
    %c0_i32 = arith.constant 0 : i32
    %c0_i32_0 = arith.constant 0 : i32
    %c0_i32_1 = arith.constant 0 : i32
    return %arg0, %c0_i32, %c0_i32_0 : i32, i32, i32
  }
}

</mosaic_0001>

<bundles_post_ra>
// kernel: tpu_custom_call.1
= control target key start
LH: loop header
LB: loop body
LE: loop exit
PB: predicated region body
PF: predicated region fallthrough
CT: control target
= control target key end

     0   :  { %10 = vsyncpa [#allocation5], 0  ;;  %s384_s0 = inlined_call_operand.<no memory space> [shape: f32[1], index: 0, kind: input, shape index: {}]   ;;  %s385_s1 = inlined_call_operand.hbm [shape: f32[8,1024], index: 1, kind: input, shape index: {}]   ;;  %s386_s2 = inlined_call_operand.hbm [shape: f32[8,1024], index: 2, kind: input, shape index: {}]   ;;  %s387_s3 = inlined_call_operand.hbm [shape: f32[8,1024], index: 3, kind: input, shape index: {}]   ;;  %s388_s4 = inlined_call_operand.hbm [shape: f32[1,8,1024], index: 4, kind: output, shape index: {}]  }
   0x1   :  { %11 = vsyncpa [#allocation8], 0 }
   0x2   :  { %12 = vsyncpa [#allocation6], 0  ;;  %s291_s15 = smov [#allocation7]   ;;  %s292_s17 = smov [#allocation4]  }
   0x3   :  { %s29_s16 = sshll.u32 %s291_s15, 4  ;;  %s19_s18 = sshll.u32 %s292_s17, 4  ;;  %s30_s16 = int_to_ptr.vmem [resolvable:$true] %s29_s16  ;;  %s20_s18 = int_to_ptr.vmem [resolvable:$true] %s19_s18 }
   0x4   :  { %s197_s21 = scalar_lea.hbm %s386_s2, 1024 }
   0x5   :  { %p198_p0 = scmp.ne.s32.totalorder %s386_s2, %s197_s21  ;;  %p201_p1 = scmp.lt.u32.totalorder %s197_s21, %s386_s2 }
   0x7   :  { %p203_p2 = pnand %p201_p1, %p198_p0 }
   0x9   :  { %206 = shalt.err (!%p203_p2)
}
   0xa   :  { %s207_s26 = scalar_lea.vmem %s30_s16, 1024  ;;  %p212_p4 = scmp.lt.s32.totalorder %s30_s16, %s30_s16 }
   0xb   :  { %p208_p3 = scmp.ne.s32.totalorder %s30_s16, %s207_s26  ;;  %p213_p5 = scmp.lt.s32.totalorder %s207_s26, %s207_s26 }
   0xd   :  { %p214_p6 = por %p213_p5, %p212_p4 }
   0xf   :  { %p215_p7 = pnand %p214_p6, %p208_p3 }
  0x11   :  { %218 = shalt.err (!%p215_p7)
}
  0x12   :  { %32 = dma.hbm_to_vmem [thread:$0]  %s386_s2, 1024, %s30_s16, [#allocation8]  }
  0x13   :  { %s219_s5 = scalar_lea.hbm %s385_s1, 1024 }
  0x14   :  { %p220_p8 = scmp.ne.s32.totalorder %s385_s1, %s219_s5  ;;  %p223_p9 = scmp.lt.u32.totalorder %s219_s5, %s385_s1 }
  0x16   :  { %p225_p10 = pnand %p223_p9, %p220_p8 }
  0x18   :  { %228 = shalt.err (!%p225_p10)
}
  0x19   :  { %s229_s10 = scalar_lea.vmem %s20_s18, 1024  ;;  %p234_p12 = scmp.lt.s32.totalorder %s20_s18, %s20_s18 }
  0x1a   :  { %p230_p11 = scmp.ne.s32.totalorder %s20_s18, %s229_s10  ;;  %p235_p13 = scmp.lt.s32.totalorder %s229_s10, %s229_s10 }
  0x1c   :  { %p236_p0 = por %p235_p13, %p234_p12 }
  0x1e   :  { %p237_p1 = pnand %p236_p0, %p230_p11 }
  0x20   :  { %240 = shalt.err (!%p237_p1)
}
  0x21   :  { %22 = dma.hbm_to_vmem [thread:$0]  %s385_s1, 1024, %s20_s18, [#allocation5]  }
  0x22   :  { %s293_s12 = smov [#allocation9]   ;;  %s241_s16 = scalar_lea.hbm %s387_s3, 1024 }
  0x23   :  { %s39_s13 = sshll.u32 %s293_s12, 4  ;;  %p242_p2 = scmp.ne.s32.totalorder %s387_s3, %s241_s16  ;;  %s40_s13 = int_to_ptr.vmem [resolvable:$true] %s39_s13 }
  0x24   :  { %p245_p3 = scmp.lt.u32.totalorder %s241_s16, %s387_s3 }
  0x26   :  { %p247_p4 = pnand %p245_p3, %p242_p2 }
  0x28   :  { %250 = shalt.err (!%p247_p4)
}
  0x29   :  { %s251_s22 = scalar_lea.vmem %s40_s13, 1024  ;;  %p256_p6 = scmp.lt.s32.totalorder %s40_s13, %s40_s13 }
  0x2a   :  { %p252_p5 = scmp.ne.s32.totalorder %s40_s13, %s251_s22  ;;  %p257_p7 = scmp.lt.s32.totalorder %s251_s22, %s251_s22 }
  0x2c   :  { %p258_p8 = por %p257_p7, %p256_p6 }
  0x2e   :  { %p259_p9 = pnand %p258_p8, %p252_p5 }
  0x30   :  { %262 = shalt.err (!%p259_p9)
}
  0x31   :  { %42 = dma.hbm_to_vmem [thread:$0]  %s387_s3, 1024, %s40_s13, [#allocation8]  }
  0x32   :  { %285 = dma.done.wait [#allocation5], 1024  }
  0x33   :  { %286 = vsyncadd [#allocation5], 4294966272 }
  0x34   :  { %287 = dma.done.wait [#allocation8], 2048  }
  0x35   :  { %288 = vsyncadd [#allocation8], 4294965248  ;;  %v63_v0 = vld [vmem:[#allocation7] sm:$0xff]  ;;  %v64_v2 = vld [vmem:[#allocation7 + $0x8] sm:$0xff]  ;;  %s53_s24 = ssub.f32 1.0, %s384_s0 }
  0x36   :  { %v79_v1 = vadd.f32 1e-05, %v63_v0  ;;  %v80_v3 = vadd.f32 1e-05, %v64_v2  ;;  %v65_v4 = vld [vmem:[#allocation7 + $0x10] sm:$0xff]  ;;  %v66_v6 = vld [vmem:[#allocation7 + $0x18] sm:$0xff] }
  0x37   :  { %v81_v5 = vadd.f32 1e-05, %v65_v4  ;;  %v82_v7 = vadd.f32 1e-05, %v66_v6  ;;  %v67_v8 = vld [vmem:[#allocation7 + $0x20] sm:$0xff]  ;;  %v68_v10 = vld [vmem:[#allocation7 + $0x28] sm:$0xff]  ;;  %v362_v19 = vstv %s53_s24 }
  0x38   :  { %181 = vrcp.f32 %v79_v1  ;;  %v83_v9 = vadd.f32 1e-05, %v67_v8  ;;  %v84_v11 = vadd.f32 1e-05, %v68_v10  ;;  %v69_v12 = vld [vmem:[#allocation7 + $0x30] sm:$0xff]  ;;  %v70_v14 = vld [vmem:[#allocation7 + $0x38] sm:$0xff] }
  0x39   :  { %183 = vrcp.f32 %v80_v3  ;;  %v85_v13 = vadd.f32 1e-05, %v69_v12  ;;  %v86_v15 = vadd.f32 1e-05, %v70_v14  ;;  %s54_s27 = sadd.f32 1.0, %s384_s0  ;;  %v55_v16 = vld [vmem:[#allocation4] sm:$0xff] }
  0x3a   :  { %185 = vrcp.f32 %v81_v5  ;;  %v56_v17 = vld [vmem:[#allocation4 + $0x8] sm:$0xff]  ;;  %v57_v20 = vld [vmem:[#allocation4 + $0x10] sm:$0xff]  ;;  %v71_v22 = vld [vmem:[#allocation9] sm:$0xff]  ;;  %s294_s0 = smov [#allocation10]  }
  0x3b   :  { %187 = vrcp.f32 %v82_v7  ;;  %v72_v24 = vld [vmem:[#allocation9 + $0x8] sm:$0xff]  ;;  %v58_v25 = vld [vmem:[#allocation4 + $0x18] sm:$0xff]  ;;  %v120_v27 = vstv %s54_s27  ;;  %v73_v29 = vld [vmem:[#allocation9 + $0x10] sm:$0xff]  ;;  %s167_s28 = sshll.u32 %s294_s0, 4  ;;  %s168_s28 = int_to_ptr.vmem [resolvable:$true] %s167_s28 }
  0x3c   :  { %189 = vrcp.f32 %v83_v9  ;;  %v59_v30 = vld [vmem:[#allocation4 + $0x20] sm:$0xff]  ;;  %v74_v34 = vld [vmem:[#allocation9 + $0x18] sm:$0xff]  ;;  %v60_v35 = vld [vmem:[#allocation4 + $0x28] sm:$0xff]  ;;  %s263_s29 = scalar_lea.vmem %s168_s28, 1024  ;;  %p268_p11 = scmp.lt.s32.totalorder %s168_s28, %s168_s28 }
  0x3d   :  { %191 = vrcp.f32 %v84_v11  ;;  %v75_v41 = vld [vmem:[#allocation9 + $0x20] sm:$0xff]  ;;  %v76_v47 = vld [vmem:[#allocation9 + $0x28] sm:$0xff]  ;;  %v61_v53 = vld [vmem:[#allocation4 + $0x30] sm:$0xff]  ;;  %p264_p10 = scmp.ne.s32.totalorder %s168_s28, %s263_s29  ;;  %p269_p12 = scmp.lt.s32.totalorder %s263_s29, %s263_s29 }
  0x3e   :  { %193 = vrcp.f32 %v85_v13  ;;  %v62_v59 = vld [vmem:[#allocation4 + $0x38] sm:$0xff]  ;;  %v77_v7 = vld [vmem:[#allocation9 + $0x30] sm:$0xff] }
  0x3f   :  { %195 = vrcp.f32 %v86_v15  ;;  %v78_v12 = vld [vmem:[#allocation9 + $0x38] sm:$0xff]  ;;  %p270_p13 = por %p269_p12, %p268_p11 }
  0x41   :  { %p271_p0 = pnand %p270_p13, %p264_p10 }
  0x42   :  { %v182_v18 = vpop.eup %181 }
  0x43   :  { %v184_v21 = vpop.eup %183  ;;  %v88_v23 = vmul.f32 %v182_v18, %v55_v16 }
  0x44   :  { %v186_v26 = vpop.eup %185  ;;  %v90_v28 = vmul.f32 %v184_v21, %v56_v17 }
  0x45   :  { %v188_v31 = vpop.eup %187  ;;  %v112_v32 = vmax.f32 %v362_v19, %v88_v23  ;;  %v92_v33 = vmul.f32 %v186_v26, %v57_v20  ;;  %v103_v37 = vmul.f32 %v88_v23, %v71_v22 }
  0x46   :  { %v190_v36 = vpop.eup %189  ;;  %v104_v38 = vmul.f32 %v90_v28, %v72_v24  ;;  %v113_v39 = vmax.f32 %v362_v19, %v90_v28  ;;  %v94_v40 = vmul.f32 %v188_v31, %v58_v25 }
  0x47   :  { %v192_v42 = vpop.eup %191  ;;  %v121_v43 = vmin.f32 %v120_v27, %v112_v32  ;;  %v105_v44 = vmul.f32 %v92_v33, %v73_v29  ;;  %v114_v45 = vmax.f32 %v362_v19, %v92_v33  ;;  %v96_v46 = vmul.f32 %v190_v36, %v59_v30 }
  0x48   :  { %v194_v48 = vpop.eup %193  ;;  %v122_v49 = vmin.f32 %v120_v27, %v113_v39  ;;  %v106_v50 = vmul.f32 %v94_v40, %v74_v34  ;;  %v115_v51 = vmax.f32 %v362_v19, %v94_v40  ;;  %v98_v52 = vmul.f32 %v192_v42, %v60_v35 }
  0x49   :  { %v196_v54 = vpop.eup %195  ;;  %v129_v55 = vmul.f32 %v121_v43, %v71_v22  ;;  %v123_v56 = vmin.f32 %v120_v27, %v114_v45  ;;  %v107_v57 = vmul.f32 %v96_v46, %v75_v41  ;;  %v116_v58 = vmax.f32 %v362_v19, %v96_v46 }
  0x4a   :  { %v130_v60 = vmul.f32 %v122_v49, %v72_v24  ;;  %v124_v61 = vmin.f32 %v120_v27, %v115_v51  ;;  %v108_v62 = vmul.f32 %v98_v52, %v76_v47  ;;  %v117_v63 = vmax.f32 %v362_v19, %v98_v52 }
  0x4b   :  { %v137_v0 = vmin.f32 %v103_v37, %v129_v55  ;;  %v131_v1 = vmul.f32 %v123_v56, %v73_v29  ;;  %v125_v2 = vmin.f32 %v120_v27, %v116_v58  ;;  %v100_v3 = vmul.f32 %v194_v48, %v61_v53 }
  0x4c   :  { %v138_v4 = vmin.f32 %v104_v38, %v130_v60  ;;  %v132_v5 = vmul.f32 %v124_v61, %v74_v34  ;;  %v126_v6 = vmin.f32 %v120_v27, %v117_v63  ;;  %v102_v8 = vmul.f32 %v196_v54, %v62_v59 }
  0x4d   :  { %153 = vst [vmem:[#allocation10] sm:$0xff] %v137_v0  ;;  %v139_v9 = vmin.f32 %v105_v44, %v131_v1  ;;  %v133_v10 = vmul.f32 %v125_v2, %v75_v41  ;;  %v118_v11 = vmax.f32 %v362_v19, %v100_v3  ;;  %v109_v17 = vmul.f32 %v100_v3, %v77_v7 }
  0x4e   :  { %154 = vst [vmem:[#allocation10 + $0x8] sm:$0xff] %v138_v4  ;;  %v140_v13 = vmin.f32 %v106_v50, %v132_v5  ;;  %v134_v14 = vmul.f32 %v126_v6, %v76_v47  ;;  %v119_v15 = vmax.f32 %v362_v19, %v102_v8  ;;  %v110_v21 = vmul.f32 %v102_v8, %v78_v12 }
  0x4f   :  { %155 = vst [vmem:[#allocation10 + $0x10] sm:$0xff] %v139_v9  ;;  %v141_v16 = vmin.f32 %v107_v57, %v133_v10  ;;  %v127_v18 = vmin.f32 %v120_v27, %v118_v11 }
  0x50   :  { %156 = vst [vmem:[#allocation10 + $0x18] sm:$0xff] %v140_v13  ;;  %v142_v20 = vmin.f32 %v108_v62, %v134_v14  ;;  %v128_v22 = vmin.f32 %v120_v27, %v119_v15 }
  0x51   :  { %157 = vst [vmem:[#allocation10 + $0x20] sm:$0xff] %v141_v16  ;;  %v135_v23 = vmul.f32 %v127_v18, %v77_v7 }
  0x52   :  { %158 = vst [vmem:[#allocation10 + $0x28] sm:$0xff] %v142_v20  ;;  %v136_v24 = vmul.f32 %v128_v22, %v78_v12 }
  0x53   :  { %v143_v25 = vmin.f32 %v109_v17, %v135_v23 }
  0x54   :  { %v144_v26 = vmin.f32 %v110_v21, %v136_v24 }
  0x55   :  { %159 = vst [vmem:[#allocation10 + $0x30] sm:$0xff] %v143_v25 }
  0x56   :  { %160 = vst [vmem:[#allocation10 + $0x38] sm:$0xff] %v144_v26 }
  0x57   :  { %274 = shalt.err (!%p271_p0)
}
  0x58   :  { %s275_s6 = scalar_lea.hbm %s388_s4, 1024 }
  0x59   :  { %p276_p1 = scmp.ne.s32.totalorder %s388_s4, %s275_s6  ;;  %p279_p2 = scmp.lt.u32.totalorder %s275_s6, %s388_s4 }
  0x5b   :  { %p281_p3 = pnand %p279_p2, %p276_p1 }
  0x5d   :  { %284 = shalt.err (!%p281_p3)
}
  0x5e   :  { %170 = dma.vmem_to_hbm [thread:$0]  %s168_s28, 1024, %s388_s4, [#allocation6]  }
  0x5f   :  { %289 = dma.done.wait [#allocation6], 1024  }
  0x60   :  { %290 = vsyncadd [#allocation6], 4294966272 }
  0x61   :  { %174 = vsyncpa [#allocation5], 1 }
  0x62   :  { %175 = vsyncpa [#allocation8], 1 }
  0x63   :  { %176 = vsyncpa [#allocation6], 1 }

</bundles_post_ra>
